<compile_context>
chip_gen: v7x
topology: tpu7x:2x2x1
jax: 0.10.0
libtpu: 0.0.40
codegen_flags: <defaults>
</compile_context>

<pallas_src>
import functools

import jax
import jax.numpy as jnp
from jax.experimental import pallas as pl
from jax.experimental.pallas import tpu as pltpu


def _ls_ce_kernel(preds_ref, target_ref, out_ref, acc_ref, *,
                  epsilon: float, batch: int, num_classes: int):
    pid = pl.program_id(0)

    @pl.when(pid == 0)
    def _init():
        acc_ref[0] = jnp.float32(0.0)

    x = preds_ref[...].astype(jnp.float32)                 # (TB, C) f32 working copy
    t = target_ref[...]                                    # (TB, 1) int32
    TB, C = x.shape

    # Per-row statistics (no (TB, C) log_preds intermediate).
    m = jnp.max(x, axis=-1, keepdims=True)                 # (TB, 1)
    s = jnp.sum(x, axis=-1, keepdims=True)                 # (TB, 1)
    lse = jnp.log(jnp.sum(jnp.exp(x - m), axis=-1, keepdims=True))  # (TB, 1)
    mlse = m + lse                                         # (TB, 1) = logsumexp(x)

    # x[i, target[i]] via iota == target masked sum (vectorized, no gather).
    col = jax.lax.broadcasted_iota(jnp.int32, (TB, C), 1)
    x_t = jnp.sum(jnp.where(col == t, x, 0.0),
                  axis=-1, keepdims=True)                  # (TB, 1)

    # Fused per-row contribution of the epsilon-weighted loss:
    #   eps/C * (C*mlse - s) + (1-eps) * (mlse - x_t)
    #     = mlse - (eps/C)*s - (1-eps)*x_t
    contrib = (mlse
               - jnp.float32(epsilon / num_classes) * s
               - jnp.float32(1.0 - epsilon) * x_t)         # (TB, 1)

    # Mask rows of the (possibly padded) final batch tile.
    row = pid * TB + jax.lax.broadcasted_iota(jnp.int32, (TB, 1), 0)
    valid = row < batch
    acc_ref[0] = acc_ref[0] + jnp.sum(jnp.where(valid, contrib, 0.0))

    @pl.when(pid == pl.num_programs(0) - 1)
    def _finalize():
        out_ref[0, 0] = acc_ref[0] * jnp.float32(1.0 / batch)


def _round_up(x: int, m: int) -> int:
    return (x + m - 1) // m * m


def _choose_block_rows(batch: int, num_classes: int, itemsize: int) -> int:
    """Pick a batch-tile row count.

    Targets ~1 MiB native-dtype HBM tiles (near the measured roofline sweet
    spot) while capping the f32 working copy at ~4 MiB so the double-buffered
    input + intermediates fit VMEM comfortably on v5e/v6e/v7x.
    """
    row_bytes_native = max(1, num_classes * itemsize)
    row_bytes_f32 = max(1, num_classes * 4)
    target_rows = (1 << 20) // row_bytes_native            # ~1 MiB native tile
    cap_rows = (4 << 20) // row_bytes_f32                  # f32 copy <= 4 MiB
    tb = max(8, min(target_rows, cap_rows, 1024))
    tb = _round_up(tb, 8)
    return min(tb, _round_up(batch, 8))


def label_smoothing_cross_entropy(preds, target, epsilon: float = 0.1,
                                  block_rows: int | None = None):
    """preds: (B, C) float (any float dtype); target: (B,) int class indices.

    Returns scalar float32 loss (reduction='mean', class_weights=None).
    """
    B, C = preds.shape
    t2 = target.astype(jnp.int32).reshape(B, 1)
    itemsize = jnp.dtype(preds.dtype).itemsize

    if block_rows is None:
        TB = _choose_block_rows(B, C, itemsize)
    else:
        TB = min(_round_up(max(block_rows, 8), 8), _round_up(B, 8))
    num_tiles = pl.cdiv(B, TB)

    tile_bytes = TB * C * itemsize
    f32_tile_bytes = TB * C * 4
    # Double-buffered native-dtype input tiles + f32 working set + headroom.
    vmem_limit = int(min(48 * 1024 * 1024,
                         max(16 * 1024 * 1024,
                             2 * tile_bytes + 6 * f32_tile_bytes + (1 << 20))))

    kernel = functools.partial(_ls_ce_kernel, epsilon=float(epsilon),
                               batch=B, num_classes=C)

    out = pl.pallas_call(
        kernel,
        out_shape=jax.ShapeDtypeStruct((1, 1), jnp.float32),
        grid=(num_tiles,),
        in_specs=[
            pl.BlockSpec((TB, C), lambda i: (i, 0)),   # preds tile (native dtype)
            pl.BlockSpec((TB, 1), lambda i: (i, 0)),   # target tile
        ],
        out_specs=pl.BlockSpec(memory_space=pltpu.MemorySpace.SMEM),
        scratch_shapes=[pltpu.SMEM((1,), jnp.float32)],
        compiler_params=pltpu.CompilerParams(
            dimension_semantics=("arbitrary",),        # grid axis is a reduction
            vmem_limit_bytes=vmem_limit,
        ),
        cost_estimate=pl.CostEstimate(
            flops=5 * B * C,
            transcendentals=B * C,
            bytes_accessed=B * C * itemsize + B * 4 + 4,
        ),
    )(preds, t2)
    return out[0, 0]


def _reference(preds, target, epsilon=0.1):
    log_preds = jax.nn.log_softmax(preds.astype(jnp.float32), axis=-1)
    C = preds.shape[-1]
    loss = jnp.mean(-jnp.sum(log_preds, axis=-1))
    nll = jnp.mean(-jnp.take_along_axis(log_preds, target[:, None], axis=-1)[:, 0])
    return epsilon * (loss / C) + (1.0 - epsilon) * nll


if __name__ == "__main__":
    key = jax.random.PRNGKey(0)
    k1, k2 = jax.random.split(key)

    # Small shapes consistent with the module's forward: preds (B, C), target (B,)
    B, C = 8, 32
    preds = jax.random.normal(k1, (B, C), dtype=jnp.float32)
    target = jax.random.randint(k2, (B,), 0, C, dtype=jnp.int32)

    out = label_smoothing_cross_entropy(preds, target, epsilon=0.1)
    out = jax.block_until_ready(out)
    ref = _reference(preds, target, epsilon=0.1)
    assert jnp.allclose(out, ref, atol=1e-5, rtol=1e-5), (out, ref)

    # Exercise a partial final tile (B not a multiple of the batch tile) and a
    # non-f32 input dtype to verify masking + native-dtype streaming.
    B2, C2 = 13, 160
    p2 = jax.random.normal(k1, (B2, C2), dtype=jnp.bfloat16)
    t2 = jax.random.randint(k2, (B2,), 0, C2, dtype=jnp.int32)
    out2 = jax.block_until_ready(
        label_smoothing_cross_entropy(p2, t2, epsilon=0.1, block_rows=8))
    ref2 = _reference(p2, t2, epsilon=0.1)
    assert jnp.allclose(out2, ref2, atol=2e-2, rtol=2e-2), (out2, ref2)

    # Auto-sized block rows on a larger-ish problem.
    B3, C3 = 1000, 512
    p3 = jax.random.normal(k1, (B3, C3), dtype=jnp.bfloat16)
    t3 = jax.random.randint(k2, (B3,), 0, C3, dtype=jnp.int32)
    out3 = jax.block_until_ready(label_smoothing_cross_entropy(p3, t3, epsilon=0.1))
    ref3 = _reference(p3, t3, epsilon=0.1)
    assert jnp.allclose(out3, ref3, atol=2e-2, rtol=2e-2), (out3, ref3)

    print("KERNEL_OK")
</pallas_src>

<mosaic_0001>
module attributes {stable_mosaic.version = 11 : i64} {
  func.func @_ls_ce_kernel(%arg0: i32, %arg1: memref<8x32xf32, #tpu.memory_space<vmem>>, %arg2: memref<8x1xi32, #tpu.memory_space<vmem>>, %arg3: memref<1x1xf32, #tpu.memory_space<smem>>, %arg4: memref<1xf32, #tpu.memory_space<smem>>) attributes {dimension_semantics = [#tpu.dimension_semantics<arbitrary>], iteration_bounds = array<i64: 1>, scalar_prefetch = 0 : i64, scratch_operands = 1 : i64, tpu.core_type = #tpu.core_type<tc>, window_params = [{transform_indices = @transform_0, window_bounds = array<i64: 8, 32>}, {transform_indices = @transform_1, window_bounds = array<i64: 8, 1>}, {transform_indices = @transform_2, window_bounds = array<i64: 1, 1>}]} {
    %c0_i32 = arith.constant 0 : i32
    %0 = arith.cmpi eq, %arg0, %c0_i32 : i32
    %1 = arith.extui %0 : i1 to i32
    %c0_i32_0 = arith.constant 0 : i32
    %2 = arith.cmpi ne, %1, %c0_i32_0 : i32
    scf.if %2 {
      %cst_17 = arith.constant 0.000000e+00 : f32
      %c0_18 = arith.constant 0 : index
      %47 = memref.load %arg4[%c0_18] : memref<1xf32, #tpu.memory_space<smem>>
      memref.store %cst_17, %arg4[%c0_18] : memref<1xf32, #tpu.memory_space<smem>>
    } else {
    }
    %c0 = arith.constant 0 : index
    %c0_1 = arith.constant 0 : index
    %3 = vector.load %arg1[%c0, %c0_1] : memref<8x32xf32, #tpu.memory_space<vmem>>, vector<8x32xf32>
    %c0_2 = arith.constant 0 : index
    %c0_3 = arith.constant 0 : index
    %4 = vector.load %arg2[%c0_2, %c0_3] : memref<8x1xi32, #tpu.memory_space<vmem>>, vector<8x1xi32>
    %cst = arith.constant dense<0xFF800000> : vector<8xf32>
    %5 = vector.multi_reduction <maximumf>, %3, %cst [1] : vector<8x32xf32> to vector<8xf32>
    %6 = vector.shape_cast %5 : vector<8xf32> to vector<8x1xf32>
    %cst_4 = arith.constant dense<0.000000e+00> : vector<8xf32>
    %7 = vector.multi_reduction <add>, %3, %cst_4 [1] : vector<8x32xf32> to vector<8xf32>
    %8 = vector.shape_cast %7 : vector<8xf32> to vector<8x1xf32>
    %9 = vector.broadcast %6 : vector<8x1xf32> to vector<8x32xf32>
    %10 = arith.subf %3, %9 : vector<8x32xf32>
    %11 = math.exp %10 : vector<8x32xf32>
    %cst_5 = arith.constant dense<0.000000e+00> : vector<8xf32>
    %12 = vector.multi_reduction <add>, %11, %cst_5 [1] : vector<8x32xf32> to vector<8xf32>
    %13 = vector.shape_cast %12 : vector<8xf32> to vector<8x1xf32>
    %14 = math.log %13 : vector<8x1xf32>
    %15 = arith.addf %6, %14 : vector<8x1xf32>
    %16 = tpu.iota {dimensions = array<i32: 1>} : vector<8x32xi32>
    %17 = vector.broadcast %4 : vector<8x1xi32> to vector<8x32xi32>
    %18 = arith.cmpi eq, %16, %17 : vector<8x32xi32>
    %cst_6 = arith.constant 0.000000e+00 : f32
    %19 = vector.broadcast %cst_6 : f32 to vector<8x32xf32>
    %20 = arith.select %18, %3, %19 : vector<8x32xi1>, vector<8x32xf32>
    %cst_7 = arith.constant dense<0.000000e+00> : vector<8xf32>
    %21 = vector.multi_reduction <add>, %20, %cst_7 [1] : vector<8x32xf32> to vector<8xf32>
    %22 = vector.shape_cast %21 : vector<8xf32> to vector<8x1xf32>
    %cst_8 = arith.constant 3.125000e-03 : f32
    %23 = vector.broadcast %cst_8 : f32 to vector<8x1xf32>
    %24 = arith.mulf %23, %8 : vector<8x1xf32>
    %25 = arith.subf %15, %24 : vector<8x1xf32>
    %cst_9 = arith.constant 0.899999976 : f32
    %26 = vector.broadcast %cst_9 : f32 to vector<8x1xf32>
    %27 = arith.mulf %26, %22 : vector<8x1xf32>
    %28 = arith.subf %25, %27 : vector<8x1xf32>
    %c8_i32 = arith.constant 8 : i32
    %29 = arith.muli %arg0, %c8_i32 : i32
    %30 = tpu.iota {dimensions = array<i32: 0>} : vector<8x1xi32>
    %31 = vector.broadcast %29 : i32 to vector<8x1xi32>
    %32 = arith.addi %31, %30 : vector<8x1xi32>
    %c8_i32_10 = arith.constant 8 : i32
    %33 = vector.broadcast %c8_i32_10 : i32 to vector<8x1xi32>
    %34 = arith.cmpi slt, %32, %33 : vector<8x1xi32>
    %c0_11 = arith.constant 0 : index
    %35 = memref.load %arg4[%c0_11] : memref<1xf32, #tpu.memory_space<smem>>
    %cst_12 = arith.constant 0.000000e+00 : f32
    %36 = vector.broadcast %cst_12 : f32 to vector<8x1xf32>
    %37 = arith.select %34, %28, %36 : vector<8x1xi1>, vector<8x1xf32>
    %38 = vector.shape_cast %37 : vector<8x1xf32> to vector<1x8x1xf32>
    %cst_13 = arith.constant dense<0.000000e+00> : vector<1xf32>
    %39 = vector.multi_reduction <add>, %38, %cst_13 [1, 2] : vector<1x8x1xf32> to vector<1xf32>
    %40 = vector.shape_cast %39 : vector<1xf32> to vector<1x1x1xf32>
    %41 = vector.extract %40[0, 0, 0] : f32 from vector<1x1x1xf32>
    %42 = arith.addf %35, %41 : f32
    %c0_14 = arith.constant 0 : index
    %43 = memref.load %arg4[%c0_14] : memref<1xf32, #tpu.memory_space<smem>>
    memref.store %42, %arg4[%c0_14] : memref<1xf32, #tpu.memory_space<smem>>
    %c0_i32_15 = arith.constant 0 : i32
    %44 = arith.cmpi eq, %arg0, %c0_i32_15 : i32
    %45 = arith.extui %44 : i1 to i32
    %c0_i32_16 = arith.constant 0 : i32
    %46 = arith.cmpi ne, %45, %c0_i32_16 : i32
    scf.if %46 {
      %c0_17 = arith.constant 0 : index
      %47 = memref.load %arg4[%c0_17] : memref<1xf32, #tpu.memory_space<smem>>
      %cst_18 = arith.constant 1.250000e-01 : f32
      %48 = arith.mulf %47, %cst_18 : f32
      %c0_19 = arith.constant 0 : index
      %c0_20 = arith.constant 0 : index
      %49 = memref.load %arg3[%c0_19, %c0_20] : memref<1x1xf32, #tpu.memory_space<smem>>
      memref.store %48, %arg3[%c0_19, %c0_20] : memref<1x1xf32, #tpu.memory_space<smem>>
    } else {
    }
    return
  }
  func.func @transform_0(%arg0: i32) -> (i32, i32) {
    %c0_i32 = arith.constant 0 : i32
    %c0_i32_0 = arith.constant 0 : i32
    return %arg0, %c0_i32 : i32, i32
  }
  func.func @transform_1(%arg0: i32) -> (i32, i32) {
    %c0_i32 = arith.constant 0 : i32
    %c0_i32_0 = arith.constant 0 : i32
    return %arg0, %c0_i32 : i32, i32
  }
  func.func @transform_2(%arg0: i32) -> (i32, i32) {
    %c0_i32 = arith.constant 0 : i32
    %c0_i32_0 = arith.constant 0 : i32
    %c0_i32_1 = arith.constant 0 : i32
    return %c0_i32, %c0_i32_0 : i32, i32
  }
}

</mosaic_0001>

<bundles_post_ra>
// kernel: tpu_custom_call.1
= control target key start
LH: loop header
LB: loop body
LE: loop exit
PB: predicated region body
PF: predicated region fallthrough
CT: control target
= control target key end

     0   :  { %vm20_vm0 = vcmask 261120   ;;  %s152_s0 = inlined_call_operand.vmem [shape: f32[8,32], index: 0, kind: input, shape index: {}]   ;;  %s153_s1 = inlined_call_operand.vmem [shape: s32[8,1], index: 1, kind: input, shape index: {}]   ;;  %s154_s2 = inlined_call_operand.hbm [shape: f32[1,1], index: 2, kind: output, shape index: {}]  }
   0x1   :  { %v18_v0 = vld [vmem:[%s152_s0] sm:$0xff] }
   0x2   :  { %7 = vsyncpa [#allocation4], 0  ;;  %v21_v1 = vsel %vm20_vm0, %v18_v0, -inf  ;;  %v113_v2 = vmov 0   ;;  %v19_v3 = vld [vmem:[%s153_s1] sm:$0xff]  ;;  %v36_v7 = vlaneseq  ;;  %v24_v12 = vsel %vm20_vm0, %v18_v0, 0.0 }
   0x3   :  { %96 = vset.pattern.permute.xlu0 %v113_v2  ;;  %vm58_vm2 = vcmask 7168   ;;  %s101_s15 = scalar_lea.hbm %s154_s2, 16 }
   0x4   :  { %22 = vmax.xlane.f32.xlu0 %v21_v1  ;;  %v37_v8 = vand.u32 127, %v36_v7  ;;  %p102_p0 = scmp.ne.s32.totalorder %s154_s2, %s101_s15  ;;  %p105_p1 = scmp.lt.u32.totalorder %s101_s15, %s154_s2 }
   0x6   :  { %p107_p2 = pnand %p105_p1, %p102_p0 }
  0x1a   :  { %39 = vperm.xlu0 %96, %v19_v3  }
  0x91   :  { %v23_v4 = vpop.xlane.xlu0 %22 }
  0x92   :  { %v27_v5 = vsub.f32 %v18_v0, %v23_v4 }
  0x94   :  { %v28_v6 = vmul.f32 1.442695, %v27_v5 }
  0x96   :  { %97 = vpow2.f32 %v28_v6 }
  0x99   :  { %v40_v9 = vpop.permute.xlu0 %39 }
  0x9a   :  { %vm41_vm1 = vcmp.eq.s32.totalorder %v37_v8, %v40_v9 }
  0x9b   :  { %v42_v13 = vsel %vm41_vm1, %v18_v0, 0.0 }
  0x9c   :  { %v43_v14 = vsel %vm20_vm0, %v42_v13, 0.0 }
  0xa0   :  { %v98_v10 = vpop.eup %97 }
  0xa1   :  { %v30_v11 = vsel %vm20_vm0, %v98_v10, 0.0 }
  0xa2   :  { %31 = vadd.xlane.f32.xlu1 %v30_v11 }
  0xa6   :  { %25 = vadd.xlane.f32.xlu1 %v24_v12 }
  0xaa   :  { %44 = vadd.xlane.f32.xlu1 %v43_v14 }
 0x12f   :  { %v32_v15 = vpop.xlane.xlu1 %31 }
 0x130   :  { %99 = vlog2.f32 %v32_v15 }
 0x133   :  { %v26_v16 = vpop.xlane.xlu1 %25 }
 0x134   :  { %v46_v21 = vmul.f32 0.003125, %v26_v16 }
 0x137   :  { %v45_v18 = vpop.xlane.xlu1 %44 }
 0x138   :  { %v48_v22 = vmul.f32 0.9, %v45_v18 }
 0x13a   :  { %v100_v17 = vpop.eup %99 }
 0x13b   :  { %v34_v19 = vmul.f32 0.6931472, %v100_v17 }
 0x13d   :  { %v35_v20 = vadd.f32 %v34_v19, %v23_v4 }
 0x13f   :  { %v47_v23 = vsub.f32 %v35_v20, %v46_v21 }
 0x141   :  { %v49_v24 = vsub.f32 %v47_v23, %v48_v22 }
 0x143   :  { %v59_v25 = vsel %vm58_vm2, %v49_v24, 0.0 }
 0x144   :  { %60 = vadd.xlane.f32.xlu1 %v59_v25 }
 0x1d1   :  { %v61_v26 = vpop.xlane.xlu1 %60 }
 0x1d2   :  { %v62_v27 = vrot.slane %v61_v26, 4 }
 0x1d4   :  { %v63_v28 = vadd.f32 %v62_v27, %v61_v26 }
 0x1d6   :  { %v64_v29 = vrot.slane %v63_v28, 2 }
 0x1d8   :  { %v65_v30 = vadd.f32 %v64_v29, %v63_v28 }
 0x1da   :  { %v66_v31 = vrot.slane %v65_v30, 1 }
 0x1dc   :  { %v67_v32 = vadd.f32 %v66_v31, %v65_v30 }
 0x1de   :  { %92 = vpush %v67_v32 }
 0x20f   :  { %s93_s0 = spop %92 }
 0x210   :  { %s76_s1 = smul.f32 0.125, %s93_s0 }
 0x212   :  { %78 = sst [smem:[#allocation3]] %s76_s1 }
 0x213   :  { %110 = shalt.err (!%p107_p2)
}
 0x214   :  { %s114_s20 = smov [#allocation3]  }
 0x215   :  { %86 = dma.smem_to_hbm %s114_s20, 16, %s154_s2, [#allocation4]  }
 0x216   :  { %111 = dma.done.wait [#allocation4], 16  }
 0x217   :  { %112 = vsyncadd [#allocation4], 4294967280 }
 0x218   :  { %90 = sfence }
 0x219   :  { %91 = vsyncpa [#allocation4], 1 }

</bundles_post_ra>
